<compile_context>
chip_gen: v7x
topology: tpu7x:2x2x1
jax: 0.10.0
libtpu: 0.0.40
codegen_flags: <defaults>
</compile_context>

<pallas_src>
import functools

import jax
import jax.numpy as jnp
from jax.experimental import pallas as pl
from jax.experimental.pallas import tpu as pltpu

EPS = 1e-5


# --------------------------------------------------------------------------- #
# Kernels
# --------------------------------------------------------------------------- #
def _cbn_fused_kernel_a(gain_ref, bias_ref, x_ref, o_ref, *, tc, inv_n, eps):
    """Layout A: x/o blocks are (B, tc, HW); gain/bias resident as (C, B) f32."""
    c0 = pl.multiple_of(pl.program_id(0) * tc, tc)
    g = gain_ref[pl.ds(c0, tc), :]                       # (tc, B)
    bt = bias_ref[pl.ds(c0, tc), :]                      # (tc, B)

    xf = x_ref[...].astype(jnp.float32)                  # (B, tc, HW)
    mean = jnp.sum(xf, axis=(0, 2), keepdims=True) * inv_n       # (1, tc, 1)
    xc = xf - mean                                       # two-pass (centered) var
    var = jnp.sum(xc * xc, axis=(0, 2), keepdims=True) * inv_n
    rstd = jax.lax.rsqrt(var + eps)                      # (1, tc, 1)

    # out = (x - mean) * rstd * gain + bias  ==  xc * scale + bias
    scale = (rstd[0] * g).T[:, :, None]                  # (B, tc, 1)
    shift = bt.T[:, :, None]                             # (B, tc, 1)
    o_ref[...] = (xc * scale + shift).astype(o_ref.dtype)


def _cbn_fused_kernel_b(gain_ref, bias_ref, x_ref, o_ref, *, tc, batch, hw,
                        inv_n, eps):
    """Layout B (small spatial): x/o blocks are (tc, B*HW), lane-dense."""
    c0 = pl.multiple_of(pl.program_id(0) * tc, tc)
    g = gain_ref[pl.ds(c0, tc), :]                       # (tc, B)
    bt = bias_ref[pl.ds(c0, tc), :]                      # (tc, B)

    xf = x_ref[...].astype(jnp.float32)                  # (tc, B*HW)
    mean = jnp.sum(xf, axis=1, keepdims=True) * inv_n    # (tc, 1)
    xc = xf - mean
    var = jnp.sum(xc * xc, axis=1, keepdims=True) * inv_n
    rstd = jax.lax.rsqrt(var + eps)                      # (tc, 1)
    xhat = xc * rstd                                     # dense (tc, B*HW)

    # Per-sample affine: gain/bias vary along the flattened lane axis in
    # HW-sized segments; apply with static slices (VMEM/vreg work only -- the
    # HBM-facing DMAs for x and out stay fully contiguous and lane-dense).
    # TODO(synk): for very large batch this unrolls `batch` small segment
    # stores; a relayout-based dense scale/shift build would shrink the IR.
    for b in range(batch):
        seg = xhat[:, b * hw:(b + 1) * hw]               # (tc, HW)
        o_ref[:, b * hw:(b + 1) * hw] = (
            seg * g[:, b:b + 1] + bt[:, b:b + 1]).astype(o_ref.dtype)


def _cbn_stats_kernel(x_ref, mean_ref, rstd_ref, s1_ref, s2_ref, *, inv_n, eps):
    """Two-pass fallback, pass 1: accumulate per-channel sum / sumsq over a
    spatial grid axis, emit mean and rstd at the last spatial step."""
    j = pl.program_id(1)

    @pl.when(j == 0)
    def _():
        s1_ref[...] = jnp.zeros_like(s1_ref)
        s2_ref[...] = jnp.zeros_like(s2_ref)

    xf = x_ref[...].astype(jnp.float32)                  # (B, tc, hws)
    s1_ref[...] += jnp.sum(xf, axis=(0, 2), keepdims=True)[0]      # (tc, 1)
    s2_ref[...] += jnp.sum(xf * xf, axis=(0, 2), keepdims=True)[0]

    @pl.when(j == pl.num_programs(1) - 1)
    def _():
        mean = s1_ref[...] * inv_n
        # TODO(synk): Chan/Welford-style centered partials would be more robust
        # than E[x^2] - E[x]^2 for extreme activation ranges.
        var = jnp.maximum(s2_ref[...] * inv_n - mean * mean, 0.0)
        mean_ref[...] = mean
        rstd_ref[...] = jax.lax.rsqrt(var + eps)


def _cbn_apply_kernel(gain_ref, bias_ref, mean_ref, rstd_ref, x_ref, o_ref, *, tc):
    """Two-pass fallback, pass 2: apply precomputed stats + conditional affine."""
    c0 = pl.multiple_of(pl.program_id(0) * tc, tc)
    g = gain_ref[pl.ds(c0, tc), :]                       # (tc, B)
    bt = bias_ref[pl.ds(c0, tc), :]                      # (tc, B)
    mean = mean_ref[...]                                 # (tc, 1)
    rstd = rstd_ref[...]                                 # (tc, 1)

    scale_cb = rstd * g                                  # (tc, B)
    shift_cb = bt - mean * scale_cb
    scale = scale_cb.T[:, :, None]                       # (B, tc, 1)
    shift = shift_cb.T[:, :, None]

    xf = x_ref[...].astype(jnp.float32)                  # (B, tc, hws)
    o_ref[...] = (xf * scale + shift).astype(o_ref.dtype)


# --------------------------------------------------------------------------- #
# Tiling / VMEM heuristics
# --------------------------------------------------------------------------- #
def _device_budgets():
    """(per-x-block byte budget, vmem_limit cap, prefer-even-grid) per TPU gen."""
    try:
        kind = jax.devices()[0].device_kind.lower()
    except Exception:  # pragma: no cover - defensive
        kind = ""
    if "v7" in kind or "7x" in kind:
        # v7x: 64 MiB VMEM, 3.2 TB/s HBM -> 4-8 MiB blocks, even grid for 2 TCs.
        return 6 * 1024 * 1024, 48 * 1024 * 1024, True
    # v5e / v6e: 128 MiB VMEM; ~85% of HBM roofline is reached by 4-8 MiB tiles.
    return 8 * 1024 * 1024, 96 * 1024 * 1024, False


def _channel_tile_candidates(C):
    return [t for t in range(C, 0, -1) if C % t == 0 and (t % 8 == 0 or t == C)]


def _pick_channel_tile(B, C, HW, itemsize, block_cap, min_steps, prefer_even_grid):
    """Largest valid channel tile whose block fits the cap while keeping a
    multi-step (and, on v7x, even-length) grid; None => needs two-pass path."""
    cands = _channel_tile_candidates(C)
    fitting = [t for t in cands if B * t * HW * itemsize <= block_cap]
    if not fitting:
        return None
    if prefer_even_grid:
        for t in fitting:                      # descending tile size
            steps = C // t
            if steps >= min_steps and steps % 2 == 0:
                return t
    for t in fitting:
        if C // t >= min_steps:
            return t
    return fitting[-1]                         # best effort: most steps possible


def _pick_spatial_tile(B, tc, HW, itemsize, block_cap):
    divs = [d for d in range(HW, 0, -1)
            if HW % d == 0 and (d % 128 == 0 or d == HW)]
    for d in divs:
        if B * tc * d * itemsize <= block_cap:
            return d
    # TODO(synk): extreme B may still exceed the cap here; accept best effort.
    return divs[-1]


def _vmem_limit(block_bytes, cap):
    # in + out blocks, double-buffered, + resident gain/bias + headroom.
    return int(min(cap, max(32 * 1024 * 1024, 4 * block_bytes + 8 * 1024 * 1024)))


# --------------------------------------------------------------------------- #
# pallas_call wrappers
# --------------------------------------------------------------------------- #
def _run_fused_a(gain_cb, bias_cb, x3, tc, vmem_limit):
    B, C, HW = x3.shape
    itemsize = jnp.dtype(x3.dtype).itemsize
    kern = functools.partial(_cbn_fused_kernel_a, tc=tc, inv_n=1.0 / (B * HW),
                             eps=EPS)
    return pl.pallas_call(
        kern,
        out_shape=jax.ShapeDtypeStruct((B, C, HW), x3.dtype),
        grid=(C // tc,),
        in_specs=[
            pl.BlockSpec((C, B), lambda i: (0, 0)),          # gain, resident
            pl.BlockSpec((C, B), lambda i: (0, 0)),          # bias, resident
            pl.BlockSpec((B, tc, HW), lambda i: (0, i, 0)),  # x channel tile
        ],
        out_specs=pl.BlockSpec((B, tc, HW), lambda i: (0, i, 0)),
        compiler_params=pltpu.CompilerParams(
            dimension_semantics=("parallel",),
            vmem_limit_bytes=vmem_limit),
        cost_estimate=pl.CostEstimate(
            flops=8 * B * C * HW,
            transcendentals=C,
            bytes_accessed=2 * B * C * HW * itemsize + 2 * B * C * 4),
    )(gain_cb, bias_cb, x3)


def _run_fused_b(gain_cb, bias_cb, x2, tc, batch, hw, vmem_limit):
    C, BHW = x2.shape
    itemsize = jnp.dtype(x2.dtype).itemsize
    kern = functools.partial(_cbn_fused_kernel_b, tc=tc, batch=batch, hw=hw,
                             inv_n=1.0 / BHW, eps=EPS)
    return pl.pallas_call(
        kern,
        out_shape=jax.ShapeDtypeStruct((C, BHW), x2.dtype),
        grid=(C // tc,),
        in_specs=[
            pl.BlockSpec((C, batch), lambda i: (0, 0)),      # gain, resident
            pl.BlockSpec((C, batch), lambda i: (0, 0)),      # bias, resident
            pl.BlockSpec((tc, BHW), lambda i: (i, 0)),       # x channel tile
        ],
        out_specs=pl.BlockSpec((tc, BHW), lambda i: (i, 0)),
        compiler_params=pltpu.CompilerParams(
            dimension_semantics=("parallel",),
            vmem_limit_bytes=vmem_limit),
        cost_estimate=pl.CostEstimate(
            flops=8 * C * BHW,
            transcendentals=C,
            bytes_accessed=2 * C * BHW * itemsize + 2 * C * batch * 4),
    )(gain_cb, bias_cb, x2)


def _run_stats(x3, tc, hws, vmem_limit):
    B, C, HW = x3.shape
    kern = functools.partial(_cbn_stats_kernel, inv_n=1.0 / (B * HW), eps=EPS)
    return pl.pallas_call(
        kern,
        out_shape=(jax.ShapeDtypeStruct((C, 1), jnp.float32),
                   jax.ShapeDtypeStruct((C, 1), jnp.float32)),
        grid=(C // tc, HW // hws),
        in_specs=[pl.BlockSpec((B, tc, hws), lambda i, j: (0, i, j))],
        out_specs=(pl.BlockSpec((tc, 1), lambda i, j: (i, 0)),
                   pl.BlockSpec((tc, 1), lambda i, j: (i, 0))),
        scratch_shapes=[pltpu.VMEM((tc, 1), jnp.float32),
                        pltpu.VMEM((tc, 1), jnp.float32)],
        compiler_params=pltpu.CompilerParams(
            dimension_semantics=("parallel", "arbitrary"),
            vmem_limit_bytes=vmem_limit),
    )(x3)


def _run_apply(gain_cb, bias_cb, mean_c, rstd_c, x3, tc, hws, vmem_limit):
    B, C, HW = x3.shape
    kern = functools.partial(_cbn_apply_kernel, tc=tc)
    return pl.pallas_call(
        kern,
        out_shape=jax.ShapeDtypeStruct((B, C, HW), x3.dtype),
        grid=(C // tc, HW // hws),
        in_specs=[
            pl.BlockSpec((C, B), lambda i, j: (0, 0)),           # gain, resident
            pl.BlockSpec((C, B), lambda i, j: (0, 0)),           # bias, resident
            pl.BlockSpec((tc, 1), lambda i, j: (i, 0)),          # mean
            pl.BlockSpec((tc, 1), lambda i, j: (i, 0)),          # rstd
            pl.BlockSpec((B, tc, hws), lambda i, j: (0, i, j)),  # x
        ],
        out_specs=pl.BlockSpec((B, tc, hws), lambda i, j: (0, i, j)),
        compiler_params=pltpu.CompilerParams(
            dimension_semantics=("parallel", "parallel"),
            vmem_limit_bytes=vmem_limit),
    )(gain_cb, bias_cb, mean_c, rstd_c, x3)


# --------------------------------------------------------------------------- #
# Public wrapper
# --------------------------------------------------------------------------- #
def conditional_batch_norm_2d(x, y, params, *, block_budget_bytes=None):
    """x: (B, C, H, W) NCHW (f32 or bf16);  y: (B,) int32 class ids."""
    B, C, H, W = x.shape
    HW = H * W
    itemsize = jnp.dtype(x.dtype).itemsize

    # Conditional affine parameters: tiny MXU-unfriendly projections, hoisted
    # out of the per-tile hot loop and computed once in f32.
    yemb = jnp.take(params["embed_w"], y, axis=0)                    # (B, C)
    gain = 1.0 + yemb @ params["gain_w_t"] + params["gain_b"]        # (B, C)
    bias = yemb @ params["bias_w_t"] + params["bias_b"]              # (B, C)
    gain_cb = gain.astype(jnp.float32).T                             # (C, B)
    bias_cb = bias.astype(jnp.float32).T                             # (C, B)

    block_budget, vmem_cap, prefer_even = _device_budgets()
    if block_budget_bytes is not None:
        block_budget = block_budget_bytes

    x3 = x.reshape(B, C, HW)          # free reshape; native dtype end-to-end
    tc = _pick_channel_tile(B, C, HW, itemsize, block_budget,
                            min_steps=4, prefer_even_grid=prefer_even)

    if tc is None:
        # Even the smallest channel slab exceeds the per-block budget (large
        # B*HW): two-pass stats + apply over a spatial grid axis (re-reads x
        # once but keeps every block within budget and fully pipelined).
        tc_fb = _channel_tile_candidates(C)[-1]
        hws = _pick_spatial_tile(B, tc_fb, HW, itemsize, block_budget)
        vmem_limit = _vmem_limit(B * tc_fb * hws * itemsize, vmem_cap)
        mean_c, rstd_c = _run_stats(x3, tc_fb, hws, vmem_limit)
        out3 = _run_apply(gain_cb, bias_cb, mean_c, rstd_c, x3, tc_fb, hws,
                          vmem_limit)
        return out3.reshape(B, C, H, W)

    vmem_limit = _vmem_limit(B * tc * HW * itemsize, vmem_cap)

    if HW % 128 == 0:
        # Layout A: spatial is already lane-dense; no extra wrapper passes.
        out3 = _run_fused_a(gain_cb, bias_cb, x3, tc, vmem_limit)
        return out3.reshape(B, C, H, W)

    # Layout B (small-spatial stages, HW % 128 != 0): fold B*HW onto the lane
    # axis so HBM DMAs stay contiguous and the output slab is lane-dense.
    # The transpose is wrapper-side layout plumbing.
    x2 = jnp.transpose(x3, (1, 0, 2)).reshape(C, B * HW)
    out2 = _run_fused_b(gain_cb, bias_cb, x2, tc, B, HW, vmem_limit)
    return jnp.transpose(out2.reshape(C, B, HW), (1, 0, 2)).reshape(B, C, H, W)


# --------------------------------------------------------------------------- #
# Parameter setup glue + reference
# --------------------------------------------------------------------------- #
def spectral_normalize(w, n_iters=30):
    # TODO(synk): PyTorch's spectral_norm does ONE power iteration per forward
    # with persistent u/v buffers; here we run a converged deterministic power
    # iteration at parameter-setup time instead.
    u = jnp.ones((w.shape[0],), w.dtype)
    v = jnp.ones((w.shape[1],), w.dtype)
    for _ in range(n_iters):
        v = w.T @ u
        v = v / (jnp.linalg.norm(v) + 1e-12)
        u = w @ v
        u = u / (jnp.linalg.norm(u) + 1e-12)
    sigma = u @ w @ v
    return w / sigma


def reference(x, y, p):
    """Plain-JAX reference matching the PyTorch training-mode forward."""
    yemb = p["embed_w"][y]
    gain = 1.0 + yemb @ p["gain_w_t"] + p["gain_b"]
    bias = yemb @ p["bias_w_t"] + p["bias_b"]
    mean = x.mean(axis=(0, 2, 3), keepdims=True)
    var = x.var(axis=(0, 2, 3), keepdims=True)        # biased, like F.batch_norm
    xhat = (x - mean) / jnp.sqrt(var + EPS)
    return xhat * gain[:, :, None, None] + bias[:, :, None, None]


if __name__ == "__main__":
    num_classes, C, B, H, W = 10, 32, 2, 16, 16

    key = jax.random.PRNGKey(0)
    k1, k2, k3, k4, k5, kx, ky, kx2, ky2 = jax.random.split(key, 9)

    # Deterministic synthetic parameters (shapes per the module's __init__).
    embed_w = spectral_normalize(
        jax.random.normal(k1, (num_classes, C), jnp.float32))
    gain_w = spectral_normalize(
        jax.random.normal(k2, (C, C), jnp.float32) / jnp.sqrt(C))
    bias_w = spectral_normalize(
        jax.random.normal(k3, (C, C), jnp.float32) / jnp.sqrt(C))
    gain_b = jax.random.uniform(k4, (1, C), jnp.float32, -0.1, 0.1)
    bias_b = jax.random.uniform(k5, (1, C), jnp.float32, -0.1, 0.1)

    params = dict(
        embed_w=embed_w,
        gain_w_t=gain_w.T, gain_b=gain_b,   # y @ W^T + b convention
        bias_w_t=bias_w.T, bias_b=bias_b,
    )
    # NOTE: running stored_mean/stored_var momentum updates (training side
    # effects) are not produced; they do not affect the training-mode output.

    # --- Case 1: f32, HW % 128 == 0 -> layout A fused kernel, grid=(4,). -----
    x = jax.random.normal(kx, (B, C, H, W), jnp.float32)
    y = jax.random.randint(ky, (B,), 0, num_classes)
    ref = reference(x, y, params)
    out = conditional_batch_norm_2d(x, y, params)
    jax.block_until_ready(out)
    assert out.shape == x.shape and out.dtype == x.dtype
    assert jnp.allclose(out, ref, atol=1e-4, rtol=1e-4), float(
        jnp.max(jnp.abs(out - ref)))

    # --- Case 2: bf16 I/O (native-dtype DMA, f32 in-kernel accumulation). ----
    x_bf = x.astype(jnp.bfloat16)
    ref_bf = reference(x_bf.astype(jnp.float32), y, params)
    out_bf = conditional_batch_norm_2d(x_bf, y, params)
    jax.block_until_ready(out_bf)
    assert out_bf.dtype == jnp.bfloat16
    assert jnp.allclose(out_bf.astype(jnp.float32), ref_bf, atol=5e-2, rtol=5e-2)

    # --- Case 3: small spatial stage (8x8 -> lane-dense (C, B*HW) layout). ---
    x_s = jax.random.normal(kx2, (4, C, 8, 8), jnp.float32)
    y_s = jax.random.randint(ky2, (4,), 0, num_classes)
    ref_s = reference(x_s, y_s, params)
    out_s = conditional_batch_norm_2d(x_s, y_s, params)
    jax.block_until_ready(out_s)
    assert jnp.allclose(out_s, ref_s, atol=1e-4, rtol=1e-4), float(
        jnp.max(jnp.abs(out_s - ref_s)))

    # --- Case 4: force the two-pass stats+apply fallback (large B*HW path). --
    out_fb = conditional_batch_norm_2d(x, y, params, block_budget_bytes=8192)
    jax.block_until_ready(out_fb)
    assert jnp.allclose(out_fb, ref, atol=1e-4, rtol=1e-4), float(
        jnp.max(jnp.abs(out_fb - ref)))

    print("KERNEL_OK")
</pallas_src>

<mosaic_0001>
module attributes {stable_mosaic.version = 11 : i64} {
  func.func @_cbn_fused_kernel_a(%arg0: i32, %arg1: memref<32x2xf32, #tpu.memory_space<vmem>>, %arg2: memref<32x2xf32, #tpu.memory_space<vmem>>, %arg3: memref<2x8x256xf32, #tpu.memory_space<vmem>>, %arg4: memref<2x8x256xf32, #tpu.memory_space<vmem>>) attributes {dimension_semantics = [#tpu.dimension_semantics<parallel>], iteration_bounds = array<i64: 4>, scalar_prefetch = 0 : i64, scratch_operands = 0 : i64, tpu.core_type = #tpu.core_type<tc>, window_params = [{pipeline_mode = #tpu.pipeline_mode<synchronous>, transform_indices = @transform_0, window_bounds = array<i64: 32, 2>}, {pipeline_mode = #tpu.pipeline_mode<synchronous>, transform_indices = @transform_1, window_bounds = array<i64: 32, 2>}, {transform_indices = @transform_2, window_bounds = array<i64: 2, 8, 256>}, {transform_indices = @transform_3, window_bounds = array<i64: 2, 8, 256>}]} {
    %c8_i32 = arith.constant 8 : i32
    %0 = arith.muli %arg0, %c8_i32 : i32
    %1 = tpu.assume_multiple %0, 8 : i32
    %2 = arith.index_cast %1 : i32 to index
    %c0 = arith.constant 0 : index
    %3 = vector.load %arg1[%2, %c0] : memref<32x2xf32, #tpu.memory_space<vmem>>, vector<8x2xf32>
    %4 = arith.index_cast %1 : i32 to index
    %c0_0 = arith.constant 0 : index
    %5 = vector.load %arg2[%4, %c0_0] : memref<32x2xf32, #tpu.memory_space<vmem>>, vector<8x2xf32>
    %c0_1 = arith.constant 0 : index
    %c0_2 = arith.constant 0 : index
    %c0_3 = arith.constant 0 : index
    %6 = vector.load %arg3[%c0_1, %c0_2, %c0_3] : memref<2x8x256xf32, #tpu.memory_space<vmem>>, vector<2x8x256xf32>
    %cst = arith.constant dense<0.000000e+00> : vector<8xf32>
    %7 = vector.multi_reduction <add>, %6, %cst [0, 2] : vector<2x8x256xf32> to vector<8xf32>
    %8 = vector.shape_cast %7 : vector<8xf32> to vector<1x8x1xf32>
    %cst_4 = arith.constant 0.001953125 : f32
    %9 = vector.broadcast %cst_4 : f32 to vector<1x8x1xf32>
    %10 = arith.mulf %8, %9 : vector<1x8x1xf32>
    %11 = vector.broadcast %10 : vector<1x8x1xf32> to vector<2x8x256xf32>
    %12 = arith.subf %6, %11 : vector<2x8x256xf32>
    %13 = arith.mulf %12, %12 : vector<2x8x256xf32>
    %cst_5 = arith.constant dense<0.000000e+00> : vector<8xf32>
    %14 = vector.multi_reduction <add>, %13, %cst_5 [0, 2] : vector<2x8x256xf32> to vector<8xf32>
    %15 = vector.shape_cast %14 : vector<8xf32> to vector<1x8x1xf32>
    %cst_6 = arith.constant 0.001953125 : f32
    %16 = vector.broadcast %cst_6 : f32 to vector<1x8x1xf32>
    %17 = arith.mulf %15, %16 : vector<1x8x1xf32>
    %cst_7 = arith.constant 9.99999974E-6 : f32
    %18 = vector.broadcast %cst_7 : f32 to vector<1x8x1xf32>
    %19 = arith.addf %17, %18 : vector<1x8x1xf32>
    %20 = math.rsqrt %19 : vector<1x8x1xf32>
    %21 = vector.shape_cast %20 : vector<1x8x1xf32> to vector<8x1xf32>
    %22 = vector.broadcast %21 : vector<8x1xf32> to vector<8x2xf32>
    %23 = arith.mulf %22, %3 : vector<8x2xf32>
    %24 = tpu.transpose %23, [1, 0] : vector<8x2xf32> -> vector<2x8xf32>
    %25 = vector.shape_cast %24 : vector<2x8xf32> to vector<2x8x1xf32>
    %26 = tpu.transpose %5, [1, 0] : vector<8x2xf32> -> vector<2x8xf32>
    %27 = vector.shape_cast %26 : vector<2x8xf32> to vector<2x8x1xf32>
    %28 = vector.broadcast %25 : vector<2x8x1xf32> to vector<2x8x256xf32>
    %29 = arith.mulf %12, %28 : vector<2x8x256xf32>
    %30 = vector.broadcast %27 : vector<2x8x1xf32> to vector<2x8x256xf32>
    %31 = arith.addf %29, %30 : vector<2x8x256xf32>
    %c0_8 = arith.constant 0 : index
    %c0_9 = arith.constant 0 : index
    %c0_10 = arith.constant 0 : index
    %32 = vector.load %arg4[%c0_8, %c0_9, %c0_10] : memref<2x8x256xf32, #tpu.memory_space<vmem>>, vector<2x8x256xf32>
    tpu.vector_store %arg4[%c0_8, %c0_9, %c0_10], %31 {strides = array<i32>} : memref<2x8x256xf32, #tpu.memory_space<vmem>>, vector<2x8x256xf32>,
    return
  }
  func.func @transform_0(%arg0: i32) -> (i32, i32) {
    %c0_i32 = arith.constant 0 : i32
    %c0_i32_0 = arith.constant 0 : i32
    %c0_i32_1 = arith.constant 0 : i32
    return %c0_i32, %c0_i32_0 : i32, i32
  }
  func.func @transform_1(%arg0: i32) -> (i32, i32) {
    %c0_i32 = arith.constant 0 : i32
    %c0_i32_0 = arith.constant 0 : i32
    %c0_i32_1 = arith.constant 0 : i32
    return %c0_i32, %c0_i32_0 : i32, i32
  }
  func.func @transform_2(%arg0: i32) -> (i32, i32, i32) {
    %c0_i32 = arith.constant 0 : i32
    %c0_i32_0 = arith.constant 0 : i32
    %c0_i32_1 = arith.constant 0 : i32
    return %c0_i32, %arg0, %c0_i32_0 : i32, i32, i32
  }
  func.func @transform_3(%arg0: i32) -> (i32, i32, i32) {
    %c0_i32 = arith.constant 0 : i32
    %c0_i32_0 = arith.constant 0 : i32
    %c0_i32_1 = arith.constant 0 : i32
    return %c0_i32, %arg0, %c0_i32_0 : i32, i32, i32
  }
}

</mosaic_0001>

<bundles_post_ra>
// kernel: tpu_custom_call.1
= control target key start
LH: loop header
LB: loop body
LE: loop exit
PB: predicated region body
PF: predicated region fallthrough
CT: control target
= control target key end

     0   :  { %8 = vsyncpa [#allocation3], 0  ;;  %s787_s0 = inlined_call_operand.vmem [shape: f32[32,2], index: 0, kind: input, shape index: {}]   ;;  %s788_s1 = inlined_call_operand.vmem [shape: f32[32,2], index: 1, kind: input, shape index: {}]   ;;  %s789_s2 = inlined_call_operand.hbm [shape: f32[2,32,256], index: 2, kind: input, shape index: {}]   ;;  %s790_s3 = inlined_call_operand.hbm [shape: f32[2,32,256], index: 3, kind: output, shape index: {}]  }
   0x1   :  { %10 = vsyncpa [#allocation3 + $0x1], 0 }
   0x2   :  { %11 = vsyncpa [#allocation4], 0 }
   0x3   :  { %13 = vsyncpa [#allocation4 + $0x1], 0  ;;  %s614_s12 = smov 0   ;;  %s616_s13 = smov 0  }
   0x4   :  { %s618_s14 = smov 0   ;;  %s620_s15 = smov 0  }
   0x5 LB: > { %s635_s16 = sadd.s32 4294967295, %s584_s15   ;;  %s416_s17 = sadd.s32 4294967294, %s584_s15   ;;  %s584_s15 = sphi %s620_s15, %s803_s15   ;;  %s580_s14 = sphi %s618_s14, %s802_s14   ;;  %s576_s13 = sphi %s616_s13, %s801_s13   ;;  %s572_s12 = sphi %s614_s12, %s800_s12  }
   0x6   : > { %s639_s18 = sadd.s32 1, %s584_s15   ;;  %s68_s19 = sadd.s32 1, %s580_s14 }
   0x7   : > { %s65_s20 = ssub.s32 %s584_s15, %s639_s18  ;;  %p75_p0 = scmp.ne.s32.totalorder %s580_s14, %s576_s13 }
   0x8   : > { %p66_p1 = scmp.eq.s32.totalorder %s65_s20, 0  ;;  %p76_p2 = scmp.eq.s32.totalorder %s584_s15, 0 }
   0x9   : > { %p81_p3 = scmp.ne.s32.totalorder %s576_s13, %s572_s12  ;;  %p82_p4 = scmp.eq.s32.totalorder %s635_s16, 0 }
   0xa   : > { %s651_s21 = scalar_select %p66_p1, %s580_s14, %s68_s19  }
   0xb   : > { %p653_p5 = por %p76_p2, %p75_p0  ;;  %p657_p6 = por %p82_p4, %p81_p3 }
   0xc   : > { %p105_p7 = scmp.eq.s32.totalorder %s635_s16, 3  ;;  %p111_p8 = scmp.eq.s32.totalorder %s416_s17, 3 }
   0xd   : > { %p445_p9 = scmp.lt.s32.totalorder %s584_s15, 4  ;;  %s137_s26 = sand.u32 1, %s580_s14  }
   0xe   : > { %p663_p10 = por %p105_p7, %p75_p0  ;;  %p667_p11 = por %p111_p8, %p81_p3 }
   0xf   : > { %s431_s27 = sshll.u32 %s584_s15, 8  ;;  %s419_s28 = sshll.u32 %s137_s26, 5 }
  0x10   : > { %s794_s24 = scalar_select %p663_p10, 1, 0 }
  0x11   : > { %s795_s25 = scalar_select %p667_p11, 1, 0 }
  0x12   : > { %s676_s4 = scalar_lea.hbm %s789_s2, %s431_s27  ;;  %s141_s5 = scalar_lea.vmem [#allocation2], %s419_s28 }
  0x13   : > { %s148_s6 = sshll.u32 %s141_s5, 4  ;;  %p680_p12 = pnand %p445_p9, %p653_p5  ;;  %s684_s6 = int_to_ptr.vmem [resolvable:$true] %s148_s6 }
  0x14   : > { %s687_s8 = scalar_lea.sflag [#allocation3], %s137_s26  ;;  %s488_s9 = scalar_lea.hbm %s676_s4, 512 }
  0x15   : > { %p489_p0 = scmp.ne.s32.totalorder %s676_s4, %s488_s9  ;;  %p490_p1 = pneg %p680_p12 }
  0x16   : > { %s493_s17 = scalar_lea.hbm %s789_s2, 2048  ;;  %p494_p4 = scmp.lt.u32.totalorder %s676_s4, %s789_s2 }
  0x17   : > { %p491_p2 = pnand %p490_p1, %p489_p0  ;;  %p495_p5 = scmp.lt.u32.totalorder %s493_s17, %s488_s9 }
  0x18   : > { %p497_p8 = scmp.lt.u32.totalorder %s488_s9, %s676_s4 }
  0x19   : > { %p492_p3 = pneg %p491_p2  ;;  %p496_p7 = por %p495_p5, %p494_p4 }
  0x1b   : > { %p498_p9 = por %p497_p8, %p496_p7 }
  0x1d   : > { %p499_p13 = pnand %p498_p9, %p492_p3 }
  0x1f   : > { %502 = shalt.err (!%p499_p13)
}
  0x20   : > { %s503_s22 = scalar_lea.vmem %s684_s6, 512  ;;  %s586_s26 = smov [#allocation2]  }
  0x21   : > { %p504_p0 = scmp.ne.s32.totalorder %s684_s6, %s503_s22  ;;  %s508_s27 = sshll.u32 %s586_s26, 4  ;;  %s509_s27 = int_to_ptr.vmem [resolvable:$false] %s508_s27 }
  0x22   : > { %s510_s28 = scalar_lea.vmem %s509_s27, 1024  ;;  %p511_p10 = scmp.lt.s32.totalorder %s684_s6, %s509_s27 }
  0x23   : > { %p506_p2 = pnand %p504_p0, %p490_p1  ;;  %p512_p4 = scmp.lt.s32.totalorder %s510_s28, %s503_s22 }
  0x25   : > { %p507_p11 = pneg %p506_p2  ;;  %p513_p5 = por %p512_p4, %p511_p10 }
  0x27   : > { %p514_p7 = pnand %p513_p5, %p507_p11 }
  0x29   : > { %517 = shalt.err (!%p514_p7)
}
  0x2a   : > { %s587_s29 = smov 1024   ;;  %s588_s30 = smov 256  }
  0x2b   : > { %s589_s5 = smov 16   ;;  %p156_p13 = scmp.lt.s32.totalorder %s584_s15, 5 }
  0x2c   : > { %440 = dma.hbm_to_vmem [thread:$0]  (!%p680_p12), %s676_s4, 512, %s684_s6, %s687_s8, %s587_s29, %s588_s30, %s589_s5  }
  0x2d   : > { %p797_p1 = scmp.ge.s32.totalorder %s584_s15, 1 }
  0x2f   : > { %p157_p3 = pnand %p797_p1, %p156_p13 }
  0x30   : > { %s719_s9 = sand.u32 (!%p157_p3), 1, %s576_s13  }
  0x31   : > { %160 = sbr.rel (%p157_p3) target bundleno = 649 (0x289), region = 32  ;;  %s423_s10 = sshll.u32 (!%p157_p3), %s719_s9, 5 }
  0x32   : > { %s163_s11 = scalar_lea.sflag (!%p157_p3), [#allocation3], %s719_s9  ;;  %s166_s17 = scalar_lea.vmem (!%p157_p3), [#allocation2], %s423_s10 }
  0x38   : > { %563 = dma.done.wait (%p657_p6), %s163_s11, 512  }
  0x39   : > { %565 = vsyncadd (%p657_p6), %s163_s11, 4294966784  ;;  %v194_v0 = vld [vmem:[%s166_s17] sm:$0xff]  ;;  %v195_v1 = vld [vmem:[%s166_s17 + $0x8] sm:$0xff]  ;;  %s425_s23 = sshll.u32 %s635_s16, 3  ;;  %v253_v27 = vlaneseq  ;;  %s188_s22 = scalar_lea.vmem [#allocation5], %s423_s10 }
  0x3a   : > { %v196_v2 = vld [vmem:[%s166_s17 + $0x10] sm:$0xff]  ;;  %v198_v3 = vadd.f32 %v195_v1, %v194_v0  ;;  %v197_v4 = vld [vmem:[%s166_s17 + $0x18] sm:$0xff]  ;;  %s190_s7 = scalar_lea.vmem %s787_s0, %s425_s23  ;;  %s192_s20 = scalar_lea.vmem %s788_s1, %s425_s23 }
  0x3b   : > { %v191_v23 = vld [vmem:[%s190_s7] sm:$0xff]  ;;  %v254_v28 = vshrl.u32 %v253_v27, 7  ;;  %s339_s26 = sshll.u32 %s188_s22, 4  ;;  %s432_s27 = sshll.u32 %s635_s16, 8  ;;  %s739_s26 = int_to_ptr.vmem [resolvable:$true] %s339_s26 }
  0x3c   : > { %v199_v5 = vadd.f32 %v198_v3, %v196_v2  ;;  %v193_v26 = vld [vmem:[%s192_s20] sm:$0xff]  ;;  %s744_s30 = scalar_lea.hbm %s790_s3, %s432_s27  ;;  %s326_s16 = scalar_lea.sflag [#allocation4], %s719_s9 }
  0x3d   : > { %v262_v29 = vsub.s32 1, %v254_v28  ;;  %v255_v30 = vsub.s32 0, %v254_v28  ;;  %s518_s5 = scalar_lea.vmem %s739_s26, 512  ;;  %p798_p10 = scmp.ne.s32.totalorder %s794_s24, 0 }
  0x3e   : > { %v200_v6 = vadd.f32 %v199_v5, %v197_v4  ;;  %p519_p6 = scmp.ne.s32.totalorder %s739_s26, %s518_s5  ;;  %s590_s10 = smov [#allocation5]  }
  0x3f   : > { %s522_s11 = sshll.u32 %s590_s10, 4  ;;  %s523_s11 = int_to_ptr.vmem [resolvable:$false] %s522_s11 }
  0x40   : > { %201 = vadd.xlane.f32.xlu0 %v200_v6  ;;  %p520_p11 = pnand %p519_p6, %p798_p10  ;;  %s524_s17 = scalar_lea.vmem %s523_s11, 1024 }
  0x41   : > { %p525_p8 = scmp.lt.s32.totalorder %s739_s26, %s523_s11  ;;  %p526_p9 = scmp.lt.s32.totalorder %s524_s17, %s518_s5 }
  0x42   : > { %p521_p12 = pneg %p520_p11 }
  0x43   : > { %p527_p0 = por %p526_p9, %p525_p8 }
  0x45   : > { %p528_p2 = pnand %p527_p0, %p521_p12 }
  0xcd   : > { %v202_v7 = vpop.xlane.xlu0 %201 }
  0xce   : > { %v203_v8 = vmul.f32 0.001953125, %v202_v7 }
  0xd0   : > { %v204_v9 = vsub.f32 %v194_v0, %v203_v8  ;;  %v205_v10 = vsub.f32 %v195_v1, %v203_v8  ;;  %v206_v11 = vsub.f32 %v196_v2, %v203_v8  ;;  %v207_v12 = vsub.f32 %v197_v4, %v203_v8 }
  0xd2   : > { %v208_v13 = vmul.f32 %v204_v9, %v204_v9  ;;  %v209_v14 = vmul.f32 %v205_v10, %v205_v10  ;;  %v210_v15 = vmul.f32 %v206_v11, %v206_v11  ;;  %v211_v17 = vmul.f32 %v207_v12, %v207_v12 }
  0xd4   : > { %v212_v16 = vadd.f32 %v209_v14, %v208_v13 }
  0xd6   : > { %v213_v18 = vadd.f32 %v212_v16, %v210_v15 }
  0xd8   : > { %v214_v19 = vadd.f32 %v213_v18, %v211_v17 }
  0xda   : > { %215 = vadd.xlane.f32.xlu0 %v214_v19 }
 0x167   : > { %v216_v20 = vpop.xlane.xlu0 %215 }
 0x168   : > { %v217_v21 = vmul.f32 0.001953125, %v216_v20 }
 0x16a   : > { %v218_v22 = vadd.f32 1e-05, %v217_v21 }
 0x16c   : > { %486 = vrsqrt.f32 %v218_v22 }
 0x176   : > { %v487_v24 = vpop.eup %486 }
 0x177   : > { %v220_v25 = vmul.f32 %v487_v24, %v191_v23 }
 0x179   : > { %221 = vxpose.xlu1.b32.start.end [1/1] (short) (narrow) %v220_v25, 8 }
 0x17d   : > { %267 = vxpose.xlu1.b32.start.end [1/1] (short) (narrow) %v193_v26, 8 }
 0x1f9   : > { %v237_v31 = vpop.trf.xlu1 }
 0x1fa   : > { %v263_v32 = vrot.slane %v237_v31, %v262_v29  ;;  %v256_v33 = vrot.slane %v237_v31, %v255_v30 }
 0x1fc   : > { %265 = vbcast.lane.b32.xlu1 %v263_v32, 256  ;;  %258 = vbcast.lane.b32.xlu0 %v256_v33, 256 }
 0x1fd   : > { %v283_v34 = vpop.trf.xlu1 }
 0x1fe   : > { %v302_v35 = vrot.slane %v283_v34, %v255_v30  ;;  %v309_v36 = vrot.slane %v283_v34, %v262_v29 }
 0x200   : > { %304 = vbcast.lane.b32.xlu0 %v302_v35, 256 }
 0x204   : > { %311 = vbcast.lane.b32.xlu0 %v309_v36, 256 }
 0x26e   : > { %v259_v37 = vpop.permute.xlu0 %258  ;;  %v266_v40 = vpop.permute.xlu1 %265 }
 0x26f   : > { %v313_v38 = vmul.f32 %v259_v37, %v204_v9  ;;  %v314_v39 = vmul.f32 %v259_v37, %v205_v10  ;;  %v315_v44 = vmul.f32 %v266_v40, %v206_v11  ;;  %v316_v45 = vmul.f32 %v266_v40, %v207_v12 }
 0x272   : > { %v305_v41 = vpop.permute.xlu0 %304 }
 0x273   : > { %v317_v42 = vadd.f32 %v313_v38, %v305_v41  ;;  %v318_v43 = vadd.f32 %v314_v39, %v305_v41 }
 0x275   : > { %321 = vst [vmem:[%s188_s22] sm:$0xff] %v317_v42  ;;  %322 = vst [vmem:[%s188_s22 + $0x8] sm:$0xff] %v318_v43 }
 0x276   : > { %v312_v46 = vpop.permute.xlu0 %311 }
 0x277   : > { %v319_v47 = vadd.f32 %v315_v44, %v312_v46  ;;  %v320_v48 = vadd.f32 %v316_v45, %v312_v46 }
 0x279   : > { %323 = vst [vmem:[%s188_s22 + $0x10] sm:$0xff] %v319_v47  ;;  %324 = vst [vmem:[%s188_s22 + $0x18] sm:$0xff] %v320_v48 }
 0x27a   : > { %531 = shalt.err (!%p528_p2)
}
 0x27b   : > { %s532_s23 = scalar_lea.hbm %s744_s30, 512  ;;  %s536_s7 = scalar_lea.hbm %s790_s3, 2048 }
 0x27c   : > { %p533_p4 = scmp.ne.s32.totalorder %s744_s30, %s532_s23  ;;  %p537_p13 = scmp.lt.u32.totalorder %s744_s30, %s790_s3 }
 0x27d   : > { %p538_p1 = scmp.lt.u32.totalorder %s536_s7, %s532_s23  ;;  %p540_p6 = scmp.lt.u32.totalorder %s532_s23, %s744_s30 }
 0x27e   : > { %p534_p5 = pnand %p533_p4, %p798_p10 }
 0x27f   : > { %p539_p3 = por %p538_p1, %p537_p13 }
 0x280   : > { %p535_p7 = pneg %p534_p5 }
 0x281   : > { %p541_p11 = por %p540_p6, %p539_p3 }
 0x283   : > { %p542_p12 = pnand %p541_p11, %p535_p7 }
 0x285   : > { %545 = shalt.err (!%p542_p12)
}
 0x286   : > { %s591_s20 = smov 256   ;;  %s592_s22 = smov 1024  }
 0x287   : > { %s593_s27 = smov 16  }
 0x288   : > { %435 = dma.vmem_to_hbm [thread:$0]  (%p798_p10), %s739_s26, 512, %s744_s30, %s326_s16, %s591_s20, %s592_s22, %s593_s27  }
 0x289 PF: > { %p446_p8 = scmp.ge.s32.totalorder %s584_s15, 2  ;;  %s354_s28 = sand.u32 1, %s572_s12  }
 0x28a   : > { %p799_p9 = scmp.ne.s32.totalorder %s795_s25, 0  ;;  %s355_s29 = scalar_lea.sflag [#allocation4], %s354_s28 }
 0x28c   : > { %p442_p0 = pnand %p446_p8, %p799_p9 }
 0x28e   : > { %567 = dma.done.wait (!%p442_p0), %s355_s29, 512  }
 0x28f   : > { %569 = vsyncadd (!%p442_p0), %s355_s29, 4294966784  ;;  %p16_p2 = scmp.ge.s32.totalorder %s639_s18, 6   ;;  %s800_s12 = smov %s576_s13 }
 0x290   : > { %s801_s13 = smov %s580_s14  ;;  %s802_s14 = smov %s651_s21 }
 0x291   : > { %s803_s15 = smov %s639_s18  ;;  %18 = sbr.rel (!%p16_p2) target bundleno = 5 (0x5), region = 79 }
 0x298   :  { %360 = vsyncpa [#allocation3], 1 }
 0x299   :  { %362 = vsyncpa [#allocation3 + $0x1], 1 }
 0x29a   :  { %363 = vsyncpa [#allocation4], 1 }
 0x29b   :  { %365 = vsyncpa [#allocation4 + $0x1], 1 }

</bundles_post_ra>
